<compile_context>
chip_gen: v7x
topology: tpu7x:2x2x1
jax: 0.10.0
libtpu: 0.0.40
codegen_flags: <defaults>
</compile_context>

<pallas_src>
import jax
import jax.numpy as jnp
from jax import lax
from jax.experimental import pallas as pl
from jax.experimental.pallas import tpu as pltpu


# ---------------------------------------------------------------------------
# Pallas kernel: (input-projection matmul) + serial recurrence + final Linear
# ---------------------------------------------------------------------------
def rnn_fc_kernel(emb_ref, wih_ref, whh_ref, b_ref, fcw_ref, fcb_ref,
                  o_ref, h_scr):
    """One grid step = one (batch-block, time-block).

    emb_ref : (BB, TT, E)   embedded tokens for this time block
    wih_ref : (E, H)        input->hidden weights   (transposed vs. torch)
    whh_ref : (H, H)        hidden->hidden weights  (transposed vs. torch)
    b_ref   : (1, H)        b_ih + b_hh
    fcw_ref : (H, OUT_PAD)  classifier weights, zero-padded to 128 lanes
    fcb_ref : (1, OUT_PAD)  classifier bias, zero-padded to 128 lanes
    o_ref   : (BB, OUT_PAD) logits slab (written on the last time block only)
    h_scr   : (BB, H)       VMEM scratch carrying the hidden state across
                            time blocks (re-initialized at t_blk == 0)
    """
    t_blk = pl.program_id(1)

    @pl.when(t_blk == 0)
    def _init():
        h_scr[...] = jnp.zeros_like(h_scr)

    BB, TT, E = emb_ref.shape

    # ---- Phase 1: input projection, hoisted off the serial critical path.
    # One (BB*TT, E) x (E, H) MXU matmul with the RNN bias folded in.
    H = whh_ref.shape[0]
    x = emb_ref[...].reshape(BB * TT, E)
    xproj = (jnp.dot(x, wih_ref[...], preferred_element_type=jnp.float32)
             + b_ref[...]).reshape(BB, TT, H)

    # ---- Phase 2: serial recurrence -- only h @ W_hh + tanh per timestep.
    # TT is a compile-time constant, so this unrolls with static indices;
    # tanh goes to the EUP slot, the (BB,H)x(H,H) matmul to the MXU.
    w_hh = whh_ref[...]
    h = h_scr[...]
    for t in range(TT):
        h = jnp.tanh(xproj[:, t, :]
                     + jnp.dot(h, w_hh, preferred_element_type=jnp.float32))
    h_scr[...] = h

    # ---- Phase 3: classifier on the final hidden state only (lane-dense).
    @pl.when(t_blk == pl.num_programs(1) - 1)
    def _finalize():
        o_ref[...] = (jnp.dot(h, fcw_ref[...],
                              preferred_element_type=jnp.float32)
                      + fcb_ref[...]).astype(o_ref.dtype)


OUT_PAD = 128  # lane-dense output slab; real logits live in columns [:2]


def rnn_forward_pallas(emb, w_ih, w_hh, b, w_fc, b_fc, *,
                       block_b=None, block_t=None):
    """emb: (B, T, E) float32 (batch-major, no transpose). Returns (B, 2)."""
    B, T, E = emb.shape
    H = w_hh.shape[0]
    assert T >= 1, "empty sequence: last-timestep feature is undefined"

    BB = B if block_b is None else block_b
    TT = T if block_t is None else block_t
    assert B % BB == 0 and T % TT == 0
    # If TT < T (long sequences), TT should be a multiple of 8 (sublanes).

    # Zero-pad the tiny (H, 2) classifier to a lane-dense (H, 128) slab so the
    # final store is an unmasked full-lane vst; sliced back in the wrapper.
    w_fc_p = jnp.zeros((H, OUT_PAD), jnp.float32).at[:, :w_fc.shape[1]].set(w_fc)
    b_fc_p = jnp.zeros((1, OUT_PAD), jnp.float32).at[:, :b_fc.shape[1]].set(b_fc)

    # TODO(synk): for v6e/v7x at production sizes, cast w_ih/w_hh and the emb
    # stream to bfloat16 (keep f32 accumulation + f32 h), re-derive TT against
    # v7x's 64 MiB VMEM, and set vmem_limit_bytes accordingly.
    grid_spec = pltpu.PrefetchScalarGridSpec(
        num_scalar_prefetch=0,
        grid=(B // BB, T // TT),
        in_specs=[
            pl.BlockSpec((BB, TT, E), lambda bi, ti: (bi, ti, 0)),  # time slab
            pl.BlockSpec((E, H), lambda bi, ti: (0, 0)),            # resident
            pl.BlockSpec((H, H), lambda bi, ti: (0, 0)),            # resident
            pl.BlockSpec((1, H), lambda bi, ti: (0, 0)),            # resident
            pl.BlockSpec((H, OUT_PAD), lambda bi, ti: (0, 0)),      # resident
            pl.BlockSpec((1, OUT_PAD), lambda bi, ti: (0, 0)),      # resident
        ],
        out_specs=pl.BlockSpec((BB, OUT_PAD), lambda bi, ti: (bi, 0)),
        scratch_shapes=[pltpu.VMEM((BB, H), jnp.float32)],
    )

    logits_pad = pl.pallas_call(
        rnn_fc_kernel,
        out_shape=jax.ShapeDtypeStruct((B, OUT_PAD), jnp.float32),
        grid_spec=grid_spec,
        compiler_params=pltpu.CompilerParams(
            # batch blocks are independent (megacore-shardable on v7x);
            # the time axis is the sequential recurrence.
            dimension_semantics=("parallel", "arbitrary")),
    )(emb, w_ih, w_hh, b, w_fc_p, b_fc_p)

    return logits_pad[:, :2]


# ---------------------------------------------------------------------------
# Full module forward (glue in plain JAX: embedding gather only)
# ---------------------------------------------------------------------------
def rnn_base_forward(tokens, params):
    """tokens: (B, T) int32.  Returns logits (B, 2)."""
    # Embedding lookup (padding_idx=0 handled by a zeroed row 0).
    # TODO(synk): the data-dependent row gather stays in XLA; at these sizes a
    #             manual DMA gather inside the kernel would add risk for a
    #             ~2 KB transfer with no measurable win.
    emb = jnp.take(params["emb_w"], tokens, axis=0).astype(jnp.float32)  # (B,T,E)
    # TODO(synk): dropout is identity (inference mode); no RNG applied.
    return rnn_forward_pallas(
        emb,
        params["w_ih"], params["w_hh"], params["b"],
        params["w_fc"], params["b_fc"],
    )


# ---------------------------------------------------------------------------
# Pure-JAX reference (semantics of torch nn.RNN, 1 layer, batch_first)
# ---------------------------------------------------------------------------
def rnn_base_reference(tokens, params):
    emb = jnp.take(params["emb_w"], tokens, axis=0).astype(jnp.float32)  # (B,T,E)
    B, T, E = emb.shape
    H = params["w_hh"].shape[0]

    def step(h, x_t):
        h_new = jnp.tanh(x_t @ params["w_ih"] + h @ params["w_hh"]
                         + params["b"][0])
        return h_new, None

    h0 = jnp.zeros((B, H), jnp.float32)
    h_last, _ = lax.scan(step, h0, jnp.transpose(emb, (1, 0, 2)))
    return h_last @ params["w_fc"] + params["b_fc"][0]


# ---------------------------------------------------------------------------
def init_params(key, vocab_size, embed_dim, hidden):
    k = jax.random.split(key, 6)
    scale_rnn = 1.0 / jnp.sqrt(hidden)
    emb_w = jax.random.normal(k[0], (vocab_size, embed_dim), jnp.float32)
    emb_w = emb_w.at[0].set(0.0)  # padding_idx=0
    return {
        "emb_w": emb_w,
        # stored pre-transposed for right-multiplication inside the kernel
        "w_ih": jax.random.uniform(k[1], (embed_dim, hidden), jnp.float32,
                                   -scale_rnn, scale_rnn),
        "w_hh": jax.random.uniform(k[2], (hidden, hidden), jnp.float32,
                                   -scale_rnn, scale_rnn),
        "b":    jax.random.uniform(k[3], (1, hidden), jnp.float32,
                                   -scale_rnn, scale_rnn),
        "w_fc": jax.random.uniform(k[4], (hidden, 2), jnp.float32,
                                   -scale_rnn, scale_rnn),
        "b_fc": jax.random.uniform(k[5], (1, 2), jnp.float32,
                                   -scale_rnn, scale_rnn),
    }


if __name__ == "__main__":
    VOCAB, EMBED, HIDDEN = 50, 32, 32
    B, T = 2, 8

    key = jax.random.PRNGKey(0)
    kp, kt = jax.random.split(key)
    params = init_params(kp, VOCAB, EMBED, HIDDEN)
    tokens = jax.random.randint(kt, (B, T), 0, VOCAB, dtype=jnp.int32)

    logits = rnn_base_forward(tokens, params)
    logits = jax.block_until_ready(logits)

    ref = rnn_base_reference(tokens, params)
    assert logits.shape == (B, 2)
    assert jnp.allclose(logits, ref, atol=1e-4, rtol=1e-4), (logits, ref)

    print("KERNEL_OK")
</pallas_src>

<mosaic_0001>
module attributes {stable_mosaic.version = 11 : i64} {
  func.func @rnn_fc_kernel(%arg0: i32, %arg1: i32, %arg2: memref<2x8x32xf32, #tpu.memory_space<vmem>>, %arg3: memref<32x32xf32, #tpu.memory_space<vmem>>, %arg4: memref<32x32xf32, #tpu.memory_space<vmem>>, %arg5: memref<1x32xf32, #tpu.memory_space<vmem>>, %arg6: memref<32x128xf32, #tpu.memory_space<vmem>>, %arg7: memref<1x128xf32, #tpu.memory_space<vmem>>, %arg8: memref<2x128xf32, #tpu.memory_space<vmem>>, %arg9: memref<2x32xf32, #tpu.memory_space<vmem>>) attributes {dimension_semantics = [#tpu.dimension_semantics<parallel>, #tpu.dimension_semantics<arbitrary>], iteration_bounds = array<i64: 1, 1>, scalar_prefetch = 0 : i64, scratch_operands = 1 : i64, tpu.core_type = #tpu.core_type<tc>, window_params = [{transform_indices = @transform_0, window_bounds = array<i64: 2, 8, 32>}, {pipeline_mode = #tpu.pipeline_mode<synchronous>, transform_indices = @transform_1, window_bounds = array<i64: 32, 32>}, {pipeline_mode = #tpu.pipeline_mode<synchronous>, transform_indices = @transform_2, window_bounds = array<i64: 32, 32>}, {pipeline_mode = #tpu.pipeline_mode<synchronous>, transform_indices = @transform_3, window_bounds = array<i64: 1, 32>}, {pipeline_mode = #tpu.pipeline_mode<synchronous>, transform_indices = @transform_4, window_bounds = array<i64: 32, 128>}, {pipeline_mode = #tpu.pipeline_mode<synchronous>, transform_indices = @transform_5, window_bounds = array<i64: 1, 128>}, {transform_indices = @transform_6, window_bounds = array<i64: 2, 128>}]} {
    %c0_i32 = arith.constant 0 : i32
    %0 = arith.cmpi eq, %arg1, %c0_i32 : i32
    %1 = arith.extui %0 : i1 to i32
    %c0_i32_0 = arith.constant 0 : i32
    %2 = arith.cmpi ne, %1, %c0_i32_0 : i32
    scf.if %2 {
      %cst_23 = arith.constant 0.000000e+00 : f32
      %57 = vector.broadcast %cst_23 : f32 to vector<2x32xf32>
      %c0_24 = arith.constant 0 : index
      %c0_25 = arith.constant 0 : index
      %58 = vector.load %arg9[%c0_24, %c0_25] : memref<2x32xf32, #tpu.memory_space<vmem>>, vector<2x32xf32>
      tpu.vector_store %arg9[%c0_24, %c0_25], %57 {strides = array<i32>} : memref<2x32xf32, #tpu.memory_space<vmem>>, vector<2x32xf32>,
    } else {
    }
    %c0 = arith.constant 0 : index
    %c0_1 = arith.constant 0 : index
    %c0_2 = arith.constant 0 : index
    %3 = vector.load %arg2[%c0, %c0_1, %c0_2] : memref<2x8x32xf32, #tpu.memory_space<vmem>>, vector<2x8x32xf32>
    %4 = vector.shape_cast %3 : vector<2x8x32xf32> to vector<16x32xf32>
    %c0_3 = arith.constant 0 : index
    %c0_4 = arith.constant 0 : index
    %5 = vector.load %arg3[%c0_3, %c0_4] : memref<32x32xf32, #tpu.memory_space<vmem>>, vector<32x32xf32>
    %cst = arith.constant dense<0.000000e+00> : vector<16x32xf32>
    %6 = tpu.matmul %4, %5, %cst {dimension_numbers = #tpu.dot_dimension_numbers<[1], [0], [0], [1], [0, 0, 1, 1], [], []>} : vector<16x32xf32>, vector<32x32xf32>, vector<16x32xf32> -> vector<16x32xf32>
    %c0_5 = arith.constant 0 : index
    %c0_6 = arith.constant 0 : index
    %7 = vector.load %arg5[%c0_5, %c0_6] : memref<1x32xf32, #tpu.memory_space<vmem>>, vector<1x32xf32>
    %8 = vector.broadcast %7 : vector<1x32xf32> to vector<16x32xf32>
    %9 = arith.addf %6, %8 : vector<16x32xf32>
    %10 = vector.shape_cast %9 : vector<16x32xf32> to vector<2x8x32xf32>
    %c0_7 = arith.constant 0 : index
    %c0_8 = arith.constant 0 : index
    %11 = vector.load %arg4[%c0_7, %c0_8] : memref<32x32xf32, #tpu.memory_space<vmem>>, vector<32x32xf32>
    %c0_9 = arith.constant 0 : index
    %c0_10 = arith.constant 0 : index
    %12 = vector.load %arg9[%c0_9, %c0_10] : memref<2x32xf32, #tpu.memory_space<vmem>>, vector<2x32xf32>
    %13 = vector.extract_strided_slice %10 {offsets = [0, 0, 0], sizes = [2, 1, 32], strides = [1, 1, 1]} : vector<2x8x32xf32> to vector<2x1x32xf32>
    %14 = vector.shape_cast %13 : vector<2x1x32xf32> to vector<2x32xf32>
    %cst_11 = arith.constant dense<0.000000e+00> : vector<2x32xf32>
    %15 = tpu.matmul %12, %11, %cst_11 {dimension_numbers = #tpu.dot_dimension_numbers<[1], [0], [0], [1], [0, 0, 1, 1], [], []>} : vector<2x32xf32>, vector<32x32xf32>, vector<2x32xf32> -> vector<2x32xf32>
    %16 = arith.addf %14, %15 : vector<2x32xf32>
    %17 = math.tanh %16 : vector<2x32xf32>
    %18 = vector.extract_strided_slice %10 {offsets = [0, 1, 0], sizes = [2, 1, 32], strides = [1, 1, 1]} : vector<2x8x32xf32> to vector<2x1x32xf32>
    %19 = vector.shape_cast %18 : vector<2x1x32xf32> to vector<2x32xf32>
    %cst_12 = arith.constant dense<0.000000e+00> : vector<2x32xf32>
    %20 = tpu.matmul %17, %11, %cst_12 {dimension_numbers = #tpu.dot_dimension_numbers<[1], [0], [0], [1], [0, 0, 1, 1], [], []>} : vector<2x32xf32>, vector<32x32xf32>, vector<2x32xf32> -> vector<2x32xf32>
    %21 = arith.addf %19, %20 : vector<2x32xf32>
    %22 = math.tanh %21 : vector<2x32xf32>
    %23 = vector.extract_strided_slice %10 {offsets = [0, 2, 0], sizes = [2, 1, 32], strides = [1, 1, 1]} : vector<2x8x32xf32> to vector<2x1x32xf32>
    %24 = vector.shape_cast %23 : vector<2x1x32xf32> to vector<2x32xf32>
    %cst_13 = arith.constant dense<0.000000e+00> : vector<2x32xf32>
    %25 = tpu.matmul %22, %11, %cst_13 {dimension_numbers = #tpu.dot_dimension_numbers<[1], [0], [0], [1], [0, 0, 1, 1], [], []>} : vector<2x32xf32>, vector<32x32xf32>, vector<2x32xf32> -> vector<2x32xf32>
    %26 = arith.addf %24, %25 : vector<2x32xf32>
    %27 = math.tanh %26 : vector<2x32xf32>
    %28 = vector.extract_strided_slice %10 {offsets = [0, 3, 0], sizes = [2, 1, 32], strides = [1, 1, 1]} : vector<2x8x32xf32> to vector<2x1x32xf32>
    %29 = vector.shape_cast %28 : vector<2x1x32xf32> to vector<2x32xf32>
    %cst_14 = arith.constant dense<0.000000e+00> : vector<2x32xf32>
    %30 = tpu.matmul %27, %11, %cst_14 {dimension_numbers = #tpu.dot_dimension_numbers<[1], [0], [0], [1], [0, 0, 1, 1], [], []>} : vector<2x32xf32>, vector<32x32xf32>, vector<2x32xf32> -> vector<2x32xf32>
    %31 = arith.addf %29, %30 : vector<2x32xf32>
    %32 = math.tanh %31 : vector<2x32xf32>
    %33 = vector.extract_strided_slice %10 {offsets = [0, 4, 0], sizes = [2, 1, 32], strides = [1, 1, 1]} : vector<2x8x32xf32> to vector<2x1x32xf32>
    %34 = vector.shape_cast %33 : vector<2x1x32xf32> to vector<2x32xf32>
    %cst_15 = arith.constant dense<0.000000e+00> : vector<2x32xf32>
    %35 = tpu.matmul %32, %11, %cst_15 {dimension_numbers = #tpu.dot_dimension_numbers<[1], [0], [0], [1], [0, 0, 1, 1], [], []>} : vector<2x32xf32>, vector<32x32xf32>, vector<2x32xf32> -> vector<2x32xf32>
    %36 = arith.addf %34, %35 : vector<2x32xf32>
    %37 = math.tanh %36 : vector<2x32xf32>
    %38 = vector.extract_strided_slice %10 {offsets = [0, 5, 0], sizes = [2, 1, 32], strides = [1, 1, 1]} : vector<2x8x32xf32> to vector<2x1x32xf32>
    %39 = vector.shape_cast %38 : vector<2x1x32xf32> to vector<2x32xf32>
    %cst_16 = arith.constant dense<0.000000e+00> : vector<2x32xf32>
    %40 = tpu.matmul %37, %11, %cst_16 {dimension_numbers = #tpu.dot_dimension_numbers<[1], [0], [0], [1], [0, 0, 1, 1], [], []>} : vector<2x32xf32>, vector<32x32xf32>, vector<2x32xf32> -> vector<2x32xf32>
    %41 = arith.addf %39, %40 : vector<2x32xf32>
    %42 = math.tanh %41 : vector<2x32xf32>
    %43 = vector.extract_strided_slice %10 {offsets = [0, 6, 0], sizes = [2, 1, 32], strides = [1, 1, 1]} : vector<2x8x32xf32> to vector<2x1x32xf32>
    %44 = vector.shape_cast %43 : vector<2x1x32xf32> to vector<2x32xf32>
    %cst_17 = arith.constant dense<0.000000e+00> : vector<2x32xf32>
    %45 = tpu.matmul %42, %11, %cst_17 {dimension_numbers = #tpu.dot_dimension_numbers<[1], [0], [0], [1], [0, 0, 1, 1], [], []>} : vector<2x32xf32>, vector<32x32xf32>, vector<2x32xf32> -> vector<2x32xf32>
    %46 = arith.addf %44, %45 : vector<2x32xf32>
    %47 = math.tanh %46 : vector<2x32xf32>
    %48 = vector.extract_strided_slice %10 {offsets = [0, 7, 0], sizes = [2, 1, 32], strides = [1, 1, 1]} : vector<2x8x32xf32> to vector<2x1x32xf32>
    %49 = vector.shape_cast %48 : vector<2x1x32xf32> to vector<2x32xf32>
    %cst_18 = arith.constant dense<0.000000e+00> : vector<2x32xf32>
    %50 = tpu.matmul %47, %11, %cst_18 {dimension_numbers = #tpu.dot_dimension_numbers<[1], [0], [0], [1], [0, 0, 1, 1], [], []>} : vector<2x32xf32>, vector<32x32xf32>, vector<2x32xf32> -> vector<2x32xf32>
    %51 = arith.addf %49, %50 : vector<2x32xf32>
    %52 = math.tanh %51 : vector<2x32xf32>
    %c0_19 = arith.constant 0 : index
    %c0_20 = arith.constant 0 : index
    %53 = vector.load %arg9[%c0_19, %c0_20] : memref<2x32xf32, #tpu.memory_space<vmem>>, vector<2x32xf32>
    tpu.vector_store %arg9[%c0_19, %c0_20], %52 {strides = array<i32>} : memref<2x32xf32, #tpu.memory_space<vmem>>, vector<2x32xf32>,
    %c0_i32_21 = arith.constant 0 : i32
    %54 = arith.cmpi eq, %arg1, %c0_i32_21 : i32
    %55 = arith.extui %54 : i1 to i32
    %c0_i32_22 = arith.constant 0 : i32
    %56 = arith.cmpi ne, %55, %c0_i32_22 : i32
    scf.if %56 {
      %c0_23 = arith.constant 0 : index
      %c0_24 = arith.constant 0 : index
      %57 = vector.load %arg6[%c0_23, %c0_24] : memref<32x128xf32, #tpu.memory_space<vmem>>, vector<32x128xf32>
      %cst_25 = arith.constant dense<0.000000e+00> : vector<2x128xf32>
      %58 = tpu.matmul %52, %57, %cst_25 {dimension_numbers = #tpu.dot_dimension_numbers<[1], [0], [0], [1], [0, 0, 1, 1], [], []>} : vector<2x32xf32>, vector<32x128xf32>, vector<2x128xf32> -> vector<2x128xf32>
      %c0_26 = arith.constant 0 : index
      %c0_27 = arith.constant 0 : index
      %59 = vector.load %arg7[%c0_26, %c0_27] : memref<1x128xf32, #tpu.memory_space<vmem>>, vector<1x128xf32>
      %60 = vector.broadcast %59 : vector<1x128xf32> to vector<2x128xf32>
      %61 = arith.addf %58, %60 : vector<2x128xf32>
      %c0_28 = arith.constant 0 : index
      %c0_29 = arith.constant 0 : index
      %62 = vector.load %arg8[%c0_28, %c0_29] : memref<2x128xf32, #tpu.memory_space<vmem>>, vector<2x128xf32>
      tpu.vector_store %arg8[%c0_28, %c0_29], %61 {strides = array<i32>} : memref<2x128xf32, #tpu.memory_space<vmem>>, vector<2x128xf32>,
    } else {
    }
    return
  }
  func.func @transform_0(%arg0: i32, %arg1: i32) -> (i32, i32, i32) {
    %c0_i32 = arith.constant 0 : i32
    %c0_i32_0 = arith.constant 0 : i32
    return %arg0, %arg1, %c0_i32 : i32, i32, i32
  }
  func.func @transform_1(%arg0: i32, %arg1: i32) -> (i32, i32) {
    %c0_i32 = arith.constant 0 : i32
    %c0_i32_0 = arith.constant 0 : i32
    %c0_i32_1 = arith.constant 0 : i32
    return %c0_i32, %c0_i32_0 : i32, i32
  }
  func.func @transform_2(%arg0: i32, %arg1: i32) -> (i32, i32) {
    %c0_i32 = arith.constant 0 : i32
    %c0_i32_0 = arith.constant 0 : i32
    %c0_i32_1 = arith.constant 0 : i32
    return %c0_i32, %c0_i32_0 : i32, i32
  }
  func.func @transform_3(%arg0: i32, %arg1: i32) -> (i32, i32) {
    %c0_i32 = arith.constant 0 : i32
    %c0_i32_0 = arith.constant 0 : i32
    %c0_i32_1 = arith.constant 0 : i32
    return %c0_i32, %c0_i32_0 : i32, i32
  }
  func.func @transform_4(%arg0: i32, %arg1: i32) -> (i32, i32) {
    %c0_i32 = arith.constant 0 : i32
    %c0_i32_0 = arith.constant 0 : i32
    %c0_i32_1 = arith.constant 0 : i32
    return %c0_i32, %c0_i32_0 : i32, i32
  }
  func.func @transform_5(%arg0: i32, %arg1: i32) -> (i32, i32) {
    %c0_i32 = arith.constant 0 : i32
    %c0_i32_0 = arith.constant 0 : i32
    %c0_i32_1 = arith.constant 0 : i32
    return %c0_i32, %c0_i32_0 : i32, i32
  }
  func.func @transform_6(%arg0: i32, %arg1: i32) -> (i32, i32) {
    %c0_i32 = arith.constant 0 : i32
    %c0_i32_0 = arith.constant 0 : i32
    return %arg0, %c0_i32 : i32, i32
  }
}

</mosaic_0001>

<bundles_post_ra>
// kernel: tpu_custom_call.1
= control target key start
LH: loop header
LB: loop body
LE: loop exit
PB: predicated region body
PF: predicated region fallthrough
CT: control target
= control target key end

     0   :  { %11 = vsyncpa [#allocation4], 0  ;;  %s1611_s0 = inlined_call_operand.hbm [shape: f32[2,8,32], index: 0, kind: input, shape index: {}]   ;;  %s1612_s1 = inlined_call_operand.hbm [shape: f32[32,32], index: 1, kind: input, shape index: {}]   ;;  %s1613_s2 = inlined_call_operand.hbm [shape: f32[32,32], index: 2, kind: input, shape index: {}]   ;;  %s1614_s3 = inlined_call_operand.vmem [shape: f32[1,32], index: 3, kind: input, shape index: {}]   ;;  %s1615_s4 = inlined_call_operand.hbm [shape: f32[32,128], index: 4, kind: input, shape index: {}]   ;;  %s1616_s5 = inlined_call_operand.vmem [shape: f32[1,128], index: 5, kind: input, shape index: {}]   ;;  %s1617_s6 = inlined_call_operand.hbm [shape: f32[2,128], index: 6, kind: output, shape index: {}]  }
   0x1   :  { %12 = vsyncpa [#allocation7], 0 }
   0x2   :  { %13 = vsyncpa [#allocation10], 0 }
   0x3   :  { %14 = vsyncpa [#allocation5], 0  ;;  %s1378_s21 = smov [#allocation6]   ;;  %s1379_s23 = smov [#allocation3]  }
   0x4   :  { %s32_s22 = sshll.u32 %s1378_s21, 4  ;;  %s20_s24 = sshll.u32 %s1379_s23, 4  ;;  %s33_s22 = int_to_ptr.vmem [resolvable:$true] %s32_s22  ;;  %s1423_s24 = int_to_ptr.vmem [resolvable:$true] %s20_s24 }
   0x5   :  { %s1260_s27 = scalar_lea.hbm %s1612_s1, 512 }
   0x6   :  { %p1261_p0 = scmp.ne.s32.totalorder %s1612_s1, %s1260_s27  ;;  %p1264_p1 = scmp.lt.u32.totalorder %s1260_s27, %s1612_s1 }
   0x8   :  { %p1266_p2 = pnand %p1264_p1, %p1261_p0 }
   0xa   :  { %1269 = shalt.err (!%p1266_p2)
}
   0xb   :  { %s1270_s8 = scalar_lea.vmem %s33_s22, 512  ;;  %p1275_p4 = scmp.lt.s32.totalorder %s33_s22, %s33_s22 }
   0xc   :  { %p1271_p3 = scmp.ne.s32.totalorder %s33_s22, %s1270_s8  ;;  %p1276_p5 = scmp.lt.s32.totalorder %s1270_s8, %s1270_s8 }
   0xe   :  { %p1277_p6 = por %p1276_p5, %p1275_p4 }
  0x10   :  { %p1278_p7 = pnand %p1277_p6, %p1271_p3 }
  0x12   :  { %1281 = shalt.err (!%p1278_p7)
}
  0x13   :  { %s1380_s9 = smov 128   ;;  %s1381_s10 = smov 8  }
  0x14   :  { %38 = dma.hbm_to_vmem [thread:$0]  %s1612_s1, 512, %s33_s22, [#allocation7], %s1380_s9, %s1380_s9, %s1381_s10  }
  0x15   :  { %s1282_s15 = scalar_lea.hbm %s1611_s0, 256 }
  0x16   :  { %p1283_p8 = scmp.ne.s32.totalorder %s1611_s0, %s1282_s15  ;;  %p1286_p9 = scmp.lt.u32.totalorder %s1282_s15, %s1611_s0 }
  0x18   :  { %p1288_p10 = pnand %p1286_p9, %p1283_p8 }
  0x1a   :  { %1291 = shalt.err (!%p1288_p10)
}
  0x1b   :  { %s1292_s20 = scalar_lea.vmem %s1423_s24, 256  ;;  %p1297_p12 = scmp.lt.s32.totalorder %s1423_s24, %s1423_s24 }
  0x1c   :  { %p1293_p11 = scmp.ne.s32.totalorder %s1423_s24, %s1292_s20  ;;  %p1298_p13 = scmp.lt.s32.totalorder %s1292_s20, %s1292_s20 }
  0x1e   :  { %p1299_p0 = por %p1298_p13, %p1297_p12 }
  0x20   :  { %p1300_p1 = pnand %p1299_p0, %p1293_p11 }
  0x22   :  { %1303 = shalt.err (!%p1300_p1)
}
  0x23   :  { %26 = dma.hbm_to_vmem [thread:$0]  %s1611_s0, 256, %s1423_s24, [#allocation4], %s1380_s9, %s1380_s9, %s1381_s10  }
  0x24   :  { %s1382_s22 = smov [#allocation8]   ;;  %s1383_s25 = smov [#allocation9]  }
  0x25   :  { %s44_s23 = sshll.u32 %s1382_s22, 4  ;;  %s58_s26 = sshll.u32 %s1383_s25, 4  ;;  %s45_s23 = int_to_ptr.vmem [resolvable:$true] %s44_s23  ;;  %s1460_s26 = int_to_ptr.vmem [resolvable:$true] %s58_s26 }
  0x26   :  { %s1304_s29 = scalar_lea.hbm %s1613_s2, 512 }
  0x27   :  { %p1305_p2 = scmp.ne.s32.totalorder %s1613_s2, %s1304_s29  ;;  %p1308_p3 = scmp.lt.u32.totalorder %s1304_s29, %s1613_s2 }
  0x29   :  { %p1310_p4 = pnand %p1308_p3, %p1305_p2 }
  0x2b   :  { %1313 = shalt.err (!%p1310_p4)
}
  0x2c   :  { %s1314_s0 = scalar_lea.vmem %s45_s23, 512  ;;  %p1319_p6 = scmp.lt.s32.totalorder %s45_s23, %s45_s23 }
  0x2d   :  { %p1315_p5 = scmp.ne.s32.totalorder %s45_s23, %s1314_s0  ;;  %p1320_p7 = scmp.lt.s32.totalorder %s1314_s0, %s1314_s0 }
  0x2f   :  { %p1321_p8 = por %p1320_p7, %p1319_p6 }
  0x31   :  { %p1322_p9 = pnand %p1321_p8, %p1315_p5 }
  0x33   :  { %1325 = shalt.err (!%p1322_p9)
}
  0x34   :  { %50 = dma.hbm_to_vmem [thread:$0]  %s1613_s2, 512, %s45_s23, [#allocation7], %s1380_s9, %s1380_s9, %s1381_s10  }
  0x35   :  { %s1326_s15 = scalar_lea.hbm %s1615_s4, 512 }
  0x36   :  { %p1327_p10 = scmp.ne.s32.totalorder %s1615_s4, %s1326_s15  ;;  %p1330_p11 = scmp.lt.u32.totalorder %s1326_s15, %s1615_s4 }
  0x38   :  { %p1332_p12 = pnand %p1330_p11, %p1327_p10 }
  0x3a   :  { %1335 = shalt.err (!%p1332_p12)
}
  0x3b   :  { %s1336_s20 = scalar_lea.vmem %s1460_s26, 512  ;;  %p1341_p0 = scmp.lt.s32.totalorder %s1460_s26, %s1460_s26 }
  0x3c   :  { %p1337_p13 = scmp.ne.s32.totalorder %s1460_s26, %s1336_s20  ;;  %p1342_p1 = scmp.lt.s32.totalorder %s1336_s20, %s1336_s20 }
  0x3e   :  { %p1343_p2 = por %p1342_p1, %p1341_p0 }
  0x40   :  { %p1344_p3 = pnand %p1343_p2, %p1337_p13 }
  0x42   :  { %1347 = shalt.err (!%p1344_p3)
}
  0x43   :  { %64 = dma.hbm_to_vmem [thread:$0]  %s1615_s4, 512, %s1460_s26, [#allocation10], %s1380_s9, %s1380_s9, %s1381_s10  }
  0x44   :  { %1370 = dma.done.wait [#allocation4], 256  }
  0x45   :  { %1371 = vsyncadd [#allocation4], 4294967040 }
  0x46   :  { %1372 = dma.done.wait [#allocation7], 1024  }
  0x47   :  { %1373 = vsyncadd [#allocation7], 4294966272 }
  0x48   :  { %1374 = dma.done.wait [#allocation10], 512  }
  0x49   :  { %1375 = vsyncadd [#allocation10], 4294966784  ;;  %v1384_v0 = vmov 0.0|0.0   ;;  %vm1385_vm0 = vmmov 0   ;;  %v1386_v1 = vmov 0.0   ;;  %vm83_vm1 = vcmask 254976  }
  0x4a   :  { %1164 = vmatprep.subr.bf16.mxu1 %v1384_v0  ;;  %1065 = vmatprep.mubr.msk.f32.mxu1 %vm1385_vm0, %v1386_v1  ;;  %84 = vst.msk [vmem:[#allocation2] sm:$0x3] %vm83_vm1, %v1386_v1  ;;  %v87_v2 = vld [vmem:[#allocation6] sm:$0xff]  ;;  %v88_v3 = vld [vmem:[#allocation6 + $0x8] sm:$0xff]  ;;  %vm98_vm2 = vcmask 261120   ;;  %v89_v7 = vld [vmem:[#allocation6 + $0x10] sm:$0xff] }
  0x4b   :  { %v180_v4 = vld [vmem:[#allocation8] sm:$0xff]  ;;  %v1156_v5 = vpack.c.bf16 %v88_v3, %v87_v2  ;;  %v181_v6 = vld [vmem:[#allocation8 + $0x8] sm:$0xff]  ;;  %v90_v8 = vld [vmem:[#allocation6 + $0x18] sm:$0xff]  ;;  %vm269_vm3 = vcmask 1041409   ;;  %vm871_vm4 = vcmask 261127   ;;  %vm873_vm5 = vcmask 253952  }
  0x4c   :  { %v1501_v9 = vpack.c.bf16 %v181_v6, %v180_v4  ;;  %v1160_v10 = vpack.c.bf16 %v90_v8, %v89_v7  ;;  %v182_v11 = vld [vmem:[#allocation8 + $0x10] sm:$0xff]  ;;  %v183_v12 = vld [vmem:[#allocation8 + $0x18] sm:$0xff]  ;;  %v982_v17 = vld [vmem:[%s1614_s3] ss:$0 sm:$0xff]  ;;  %s1387_s21 = smov [#allocation11]  }
  0x4d   :  { %v85_v13 = vld [vmem:[#allocation3] sm:$0xff]  ;;  %1157 = vmatprep.subr.bf16.mxu0 %v1156_v5  ;;  %v1505_v14 = vpack.c.bf16 %v183_v12, %v182_v11  ;;  %v86_v16 = vld [vmem:[#allocation3 + $0x8] sm:$0xff]  ;;  %s971_s22 = sshll.u32 %s1387_s21, 4  ;;  %s972_s22 = int_to_ptr.vmem [resolvable:$true] %s971_s22 }
  0x4e   :  { %1054 = vmatprep.mubr.msk.f32.mxu0 %vm98_vm2, %v85_v13  ;;  %1166 = vmatpush3.bf16.msra.mxu1 %v1501_v9  ;;  %s1348_s23 = scalar_lea.vmem %s972_s22, 32  ;;  %p1353_p5 = scmp.lt.s32.totalorder %s972_s22, %s972_s22 }
  0x4f   :  { %1159 = vmatpush3.bf16.msra.mxu0 %v1156_v5  ;;  %1167 = vmatprep.subr.bf16.mxu1 %v1384_v0  ;;  %p1349_p4 = scmp.ne.s32.totalorder %s972_s22, %s1348_s23  ;;  %p1354_p6 = scmp.lt.s32.totalorder %s1348_s23, %s1348_s23 }
  0x50   :  { %1161 = vmatprep.subr.bf16.mxu0 %v1160_v10 }
  0x51   :  { %v184_v15 = vld [vmem:[#allocation2] sm:$0x3]  ;;  %p1355_p7 = por %p1354_p6, %p1353_p5 }
  0x52   :  { %1169 = vmatpush3.bf16.msra.mxu1 %v1505_v14 }
  0x53   :  { %1163 = vmatpush3.bf16.msra.mxu0 %v1160_v10  ;;  %1176 = vmatprep.subr.bf16.mxu1 %v1384_v0  ;;  %p1356_p8 = pnand %p1355_p7, %p1349_p4 }
  0x54   :  { %1170 = vmatprep.subr.bf16.mxu0 %v1384_v0 }
  0x55   :  { %1066 = vmatmul.mubr.msk.f32.vlgmr.msra.gmra.mrb[0].mxu1 %vm98_vm2, %v184_v15 }
  0x56   :  { %1055 = vmatmul.mubr.msk.f32.vlgmr.msra.gmra.mrb[0].mxu0 %vm98_vm2, %v86_v16  ;;  %1178 = vmatpush3.bf16.msra.mxu1 %v1501_v9 }
  0x57   :  { %1172 = vmatpush3.bf16.msra.mxu0 %v1501_v9  ;;  %1076 = vmatprep.mubr.msk.f32.mxu0 %vm1385_vm0, %v1386_v1 }
  0x58   :  { %1173 = vmatprep.subr.bf16.mxu0 %v1384_v0  ;;  %1179 = vmatprep.subr.bf16.mxu1 %v1384_v0 }
  0x59   :  { %1087 = vmatprep.mubr.msk.f32.mxu1 %vm1385_vm0, %v1386_v1 }
  0x5a   :  { %1181 = vmatpush3.bf16.msra.mxu1 %v1505_v14 }
  0x5b   :  { %1175 = vmatpush3.bf16.msra.mxu0 %v1505_v14  ;;  %1188 = vmatprep.subr.bf16.mxu1 %v1384_v0 }
  0x5c   :  { %1182 = vmatprep.subr.bf16.mxu0 %v1384_v0 }
 0x128   :  { %v254_v18 = vpop.f32.mrb[0].mxu1 }
 0x129   :  { %v1056_v19 = vpop.f32.mrb[0].mxu0  ;;  %v259_v20 = vrot.slane %v254_v18, 1  ;;  %v1067_v22 = vpop.f32.mrb[1].mxu1 }
 0x12a   :  { %v1528_v21 = vadd.f32 %v1056_v19, %v982_v17  ;;  %v171_v23 = vpop.f32.mrb[1].mxu0 }
 0x12b   :  { %v1530_v24 = vadd.f32 %v982_v17, %v171_v23 }
 0x12c   :  { %v263_v25 = vadd.f32 %v259_v20, %v1528_v21 }
 0x12d   :  { %v262_v26 = vadd.f32 %v254_v18, %v1530_v24 }
 0x12e   :  { %1228 = vtanh.f32 %v263_v25 }
 0x12f   :  { %1230 = vtanh.f32 %v262_v26 }
 0x138   :  { %v1229_v27 = vpop.eup %1228 }
 0x139   :  { %v1231_v28 = vpop.eup %1230  ;;  %v268_v29 = vrot.slane %v1229_v27, 7 }
 0x13b   :  { %v270_v30 = vsel %vm269_vm3, %v268_v29, %v1231_v28 }
 0x13c   :  { %1077 = vmatmul.mubr.msk.f32.vlgmr.msra.gmra.mrb[2].mxu0 %vm98_vm2, %v270_v30 }
 0x13d   :  { %1184 = vmatpush3.bf16.msra.mxu0 %v1501_v9  ;;  %1098 = vmatprep.mubr.msk.f32.mxu0 %vm1385_vm0, %v1386_v1 }
 0x13e   :  { %1185 = vmatprep.subr.bf16.mxu0 %v1384_v0 }
 0x141   :  { %1187 = vmatpush3.bf16.msra.mxu0 %v1505_v14 }
 0x142   :  { %1194 = vmatprep.subr.bf16.mxu0 %v1384_v0 }
 0x20f   :  { %v339_v31 = vpop.f32.mrb[2].mxu0 }
 0x210   :  { %v344_v32 = vrot.slane %v339_v31, 7  ;;  %v1078_v33 = vpop.f32.mrb[3].mxu0  ;;  %v348_v35 = vadd.f32 %v339_v31, %v1528_v21 }
 0x212   :  { %v347_v34 = vadd.f32 %v344_v32, %v1530_v24 }
 0x214   :  { %1232 = vtanh.f32 %v347_v34 }
 0x215   :  { %1234 = vtanh.f32 %v348_v35  ;;  %v878_v35 = vld [vmem:[#allocation9] sm:$0xff] }
 0x21e   :  { %v1233_v36 = vpop.eup %1232 }
 0x21f   :  { %v353_v37 = vrot.slane %v1233_v36, 1  ;;  %v1235_v38 = vpop.eup %1234 }
 0x221   :  { %v354_v39 = vsel %vm269_vm3, %v1235_v38, %v353_v37  ;;  %v880_v37 = vld [vmem:[#allocation9 + $0x10] sm:$0xff]  ;;  %v881_v38 = vld [vmem:[#allocation9 + $0x18] sm:$0xff] }
 0x222   :  { %1088 = vmatmul.mubr.msk.f32.vlgmr.msra.gmra.mrb[2].mxu1 %vm98_vm2, %v354_v39  ;;  %v1216_v39 = vpack.c.bf16 %v881_v38, %v880_v37 }
 0x223   :  { %1190 = vmatpush3.bf16.msra.mxu1 %v1501_v9  ;;  %1109 = vmatprep.mubr.msk.f32.mxu1 %vm1385_vm0, %v1386_v1 }
 0x224   :  { %1191 = vmatprep.subr.bf16.mxu1 %v1384_v0 }
 0x227   :  { %1193 = vmatpush3.bf16.msra.mxu1 %v1505_v14 }
 0x228   :  { %1200 = vmatprep.subr.bf16.mxu1 %v1384_v0 }
 0x2f5   :  { %v423_v40 = vpop.f32.mrb[2].mxu1 }
 0x2f6   :  { %v428_v41 = vrot.slane %v423_v40, 6  ;;  %v429_v42 = vrot.slane %v423_v40, 7  ;;  %v1089_v43 = vpop.f32.mrb[3].mxu1 }
 0x2f8   :  { %v432_v44 = vadd.f32 %v428_v41, %v1530_v24  ;;  %v433_v45 = vadd.f32 %v429_v42, %v1528_v21 }
 0x2fa   :  { %1236 = vtanh.f32 %v432_v44 }
 0x2fb   :  { %1238 = vtanh.f32 %v433_v45 }
 0x304   :  { %v1237_v46 = vpop.eup %1236 }
 0x305   :  { %v1239_v47 = vpop.eup %1238  ;;  %v438_v48 = vrot.slane %v1237_v46, 2 }
 0x306   :  { %v439_v49 = vrot.slane %v1239_v47, 1 }
 0x308   :  { %v440_v50 = vsel %vm269_vm3, %v439_v49, %v438_v48 }
 0x309   :  { %1099 = vmatmul.mubr.msk.f32.vlgmr.msra.gmra.mrb[4].mxu0 %vm98_vm2, %v440_v50 }
 0x30a   :  { %1196 = vmatpush3.bf16.msra.mxu0 %v1501_v9  ;;  %1120 = vmatprep.mubr.msk.f32.mxu0 %vm1385_vm0, %v1386_v1 }
 0x30b   :  { %1197 = vmatprep.subr.bf16.mxu0 %v1384_v0 }
 0x30e   :  { %1199 = vmatpush3.bf16.msra.mxu0 %v1505_v14 }
 0x30f   :  { %1206 = vmatprep.subr.bf16.mxu0 %v1384_v0 }
 0x3dc   :  { %v509_v51 = vpop.f32.mrb[4].mxu0 }
 0x3dd   :  { %v514_v52 = vrot.slane %v509_v51, 5  ;;  %v515_v53 = vrot.slane %v509_v51, 6  ;;  %v1100_v54 = vpop.f32.mrb[5].mxu0 }
 0x3df   :  { %v518_v55 = vadd.f32 %v514_v52, %v1530_v24  ;;  %v519_v56 = vadd.f32 %v515_v53, %v1528_v21 }
 0x3e1   :  { %1240 = vtanh.f32 %v518_v55 }
 0x3e2   :  { %1242 = vtanh.f32 %v519_v56 }
 0x3eb   :  { %v1241_v57 = vpop.eup %1240 }
 0x3ec   :  { %v1243_v58 = vpop.eup %1242  ;;  %v524_v59 = vrot.slane %v1241_v57, 3 }
 0x3ed   :  { %v525_v60 = vrot.slane %v1243_v58, 2 }
 0x3ef   :  { %v526_v61 = vsel %vm269_vm3, %v525_v60, %v524_v59 }
 0x3f0   :  { %1110 = vmatmul.mubr.msk.f32.vlgmr.msra.gmra.mrb[4].mxu1 %vm98_vm2, %v526_v61 }
 0x3f1   :  { %1202 = vmatpush3.bf16.msra.mxu1 %v1501_v9  ;;  %1131 = vmatprep.mubr.msk.f32.mxu1 %vm1385_vm0, %v1386_v1 }
 0x3f2   :  { %1203 = vmatprep.subr.bf16.mxu1 %v1384_v0 }
 0x3f5   :  { %1205 = vmatpush3.bf16.msra.mxu1 %v1505_v14 }
 0x3f6   :  { %1212 = vmatprep.subr.bf16.mxu1 %v1384_v0 }
 0x4c3   :  { %v595_v62 = vpop.f32.mrb[4].mxu1 }
 0x4c4   :  { %v600_v63 = vrot.slane %v595_v62, 4  ;;  %v601_v2 = vrot.slane %v595_v62, 5  ;;  %v1111_v3 = vpop.f32.mrb[5].mxu1 }
 0x4c6   :  { %v604_v4 = vadd.f32 %v600_v63, %v1530_v24  ;;  %v605_v5 = vadd.f32 %v601_v2, %v1528_v21 }
 0x4c8   :  { %1244 = vtanh.f32 %v604_v4 }
 0x4c9   :  { %1246 = vtanh.f32 %v605_v5 }
 0x4d2   :  { %v1245_v6 = vpop.eup %1244 }
 0x4d3   :  { %v1247_v7 = vpop.eup %1246  ;;  %v610_v8 = vrot.slane %v1245_v6, 4 }
 0x4d4   :  { %v611_v10 = vrot.slane %v1247_v7, 3 }
 0x4d6   :  { %v612_v11 = vsel %vm269_vm3, %v611_v10, %v610_v8 }
 0x4d7   :  { %1121 = vmatmul.mubr.msk.f32.vlgmr.msra.gmra.mrb[6].mxu0 %vm98_vm2, %v612_v11 }
 0x4d8   :  { %1208 = vmatpush3.bf16.msra.mxu0 %v1501_v9  ;;  %1142 = vmatprep.mubr.msk.f32.mxu0 %vm1385_vm0, %v1386_v1 }
 0x4d9   :  { %1209 = vmatprep.subr.bf16.mxu0 %v1384_v0 }
 0x4dc   :  { %1211 = vmatpush3.bf16.msra.mxu0 %v1505_v14 }
 0x5aa   :  { %v681_v12 = vpop.f32.mrb[6].mxu0 }
 0x5ab   :  { %v686_v13 = vrot.slane %v681_v12, 3  ;;  %v687_v15 = vrot.slane %v681_v12, 4  ;;  %v1122_v16 = vpop.f32.mrb[7].mxu0 }
 0x5ad   :  { %v690_v17 = vadd.f32 %v686_v13, %v1530_v24  ;;  %v691_v18 = vadd.f32 %v687_v15, %v1528_v21 }
 0x5af   :  { %1248 = vtanh.f32 %v690_v17 }
 0x5b0   :  { %1250 = vtanh.f32 %v691_v18 }
 0x5b9   :  { %v1249_v19 = vpop.eup %1248 }
 0x5ba   :  { %v1251_v20 = vpop.eup %1250  ;;  %v696_v9 = vrot.slane %v1249_v19, 5 }
 0x5bb   :  { %v697_v22 = vrot.slane %v1251_v20, 4 }
 0x5bd   :  { %v698_v23 = vsel %vm269_vm3, %v697_v22, %v696_v9 }
 0x5be   :  { %1132 = vmatmul.mubr.msk.f32.vlgmr.msra.gmra.mrb[6].mxu1 %vm98_vm2, %v698_v23 }
 0x5bf   :  { %1153 = vmatprep.mubr.msk.f32.mxu1 %vm1385_vm0, %v1386_v1  ;;  %v879_v1 = vld [vmem:[#allocation9 + $0x8] sm:$0xff] }
 0x5c0   :  { %v1213_v36 = vpack.c.bf16 %v879_v1, %v878_v35 }
 0x5c2   :  { %1214 = vmatpush3.bf16.msra.mxu1 %v1213_v36 }
 0x5c3   :  { %1215 = vmatprep.subr.bf16.mxu1 %v1384_v0 }
 0x5c6   :  { %1217 = vmatpush3.bf16.msra.mxu1 %v1216_v39 }
 0x691   :  { %v767_v14 = vpop.f32.mrb[6].mxu1 }
 0x692   :  { %v772_v25 = vrot.slane %v767_v14, 2  ;;  %v773_v26 = vrot.slane %v767_v14, 3  ;;  %v1133_v27 = vpop.f32.mrb[7].mxu1 }
 0x694   :  { %v776_v28 = vadd.f32 %v772_v25, %v1530_v24  ;;  %v777_v29 = vadd.f32 %v773_v26, %v1528_v21 }
 0x696   :  { %1252 = vtanh.f32 %v776_v28 }
 0x697   :  { %1254 = vtanh.f32 %v777_v29 }
 0x6a0   :  { %v1253_v30 = vpop.eup %1252 }
 0x6a1   :  { %v1255_v31 = vpop.eup %1254  ;;  %v782_v32 = vrot.slane %v1253_v30, 6 }
 0x6a2   :  { %v783_v33 = vrot.slane %v1255_v31, 5 }
 0x6a4   :  { %v784_v34 = vsel %vm269_vm3, %v783_v33, %v782_v32 }
 0x6a5   :  { %1143 = vmatmul.mubr.msk.f32.vlgmr.msra.gmra.mrb[8].mxu0 %vm98_vm2, %v784_v34 }
 0x778   :  { %v853_v40 = vpop.f32.mrb[8].mxu0 }
 0x779   :  { %v858_v41 = vrot.slane %v853_v40, 1  ;;  %v859_v42 = vrot.slane %v853_v40, 2  ;;  %v1144_v43 = vpop.f32.mrb[9].mxu0 }
 0x77b   :  { %v862_v44 = vadd.f32 %v858_v41, %v1530_v24  ;;  %v863_v45 = vadd.f32 %v859_v42, %v1528_v21  ;;  %v993_v24 = vld [vmem:[%s1616_s5] ss:$0 sm:$0xff] }
 0x77d   :  { %1256 = vtanh.f32 %v862_v44 }
 0x77e   :  { %1258 = vtanh.f32 %v863_v45 }
 0x787   :  { %v1257_v46 = vpop.eup %1256 }
 0x788   :  { %v1259_v47 = vpop.eup %1258  ;;  %872 = vst.msk [vmem:[#allocation2 - $0x7] sm:$0x80] %vm871_vm4, %v1257_v46  ;;  %v889_v0 = vrot.slane %v1257_v46, 7 }
 0x789   :  { %v868_v48 = vrot.slane %v1259_v47, 7  ;;  %v890_v49 = vrot.slane %v1259_v47, 6 }
 0x78b   :  { %874 = vst.msk [vmem:[#allocation2 + $0x1] sm:$0x1] %vm873_vm5, %v868_v48  ;;  %v891_v50 = vsel %vm269_vm3, %v890_v49, %v889_v0 }
 0x78c   :  { %1154 = vmatmul.mubr.msk.f32.vlgmr.msra.gmra.mrb[8].mxu1 %vm98_vm2, %v891_v50 }
 0x85f   :  { %v960_v21 = vpop.f32.mrb[8].mxu1 }
 0x860   :  { %v961_v51 = vadd.f32 %v993_v24, %v960_v21  ;;  %v1155_v52 = vpop.f32.mrb[9].mxu1 }
 0x862   :  { %964 = vst [vmem:[#allocation11] sm:$0x3] %v961_v51 }
 0x863   :  { %1359 = shalt.err (!%p1356_p8)
}
 0x864   :  { %s1360_s27 = scalar_lea.hbm %s1617_s6, 32 }
 0x865   :  { %p1361_p9 = scmp.ne.s32.totalorder %s1617_s6, %s1360_s27  ;;  %p1364_p10 = scmp.lt.u32.totalorder %s1360_s27, %s1617_s6 }
 0x867   :  { %p1366_p11 = pnand %p1364_p10, %p1361_p9 }
 0x869   :  { %1369 = shalt.err (!%p1366_p11)
}
 0x86a   :  { %974 = dma.vmem_to_hbm [thread:$0]  %s972_s22, 32, %s1617_s6, [#allocation5]  }
 0x86b   :  { %1376 = dma.done.wait [#allocation5], 32  }
 0x86c   :  { %1377 = vsyncadd [#allocation5], 4294967264 }
 0x86d   :  { %978 = vsyncpa [#allocation4], 1 }
 0x86e   :  { %979 = vsyncpa [#allocation7], 1 }
 0x86f   :  { %980 = vsyncpa [#allocation10], 1 }
 0x870   :  { %981 = vsyncpa [#allocation5], 1 }

</bundles_post_ra>
